<compile_context>
chip_gen: v6e
topology: v6e:2x2x1
jax: 0.10.0
libtpu: 0.0.40
codegen_flags: <defaults>
</compile_context>

<pallas_src>
import math
from functools import partial
from typing import NamedTuple

import jax
import jax.numpy as jnp
from jax.experimental import pallas as pl
from jax.experimental.pallas import tpu as pltpu

EPS = 1e-08

# Fast-path limits (single reduction tile / single output tile).
FAST_F_MAX = 1024          # max un-tiled contraction length
FAST_TO_MAX = 512          # max 2*O_pad handled as one lane-dense output tile
# General-path tile caps (safe on v5e/v6e/v7x without raising scoped VMEM).
TB_CAP = 256
TK_CAP = 1024
TO_CAP = 1024


def _round_up(x, m):
    return ((x + m - 1) // m) * m


# --------------------------------------------------------------------------
# Kernels
# --------------------------------------------------------------------------
def _fast_kernel(x_ref, w_ref, b_ref, out_ref, *, o_pad):
    """Single-shot fused projection: one dot, bias add, in-tile mu/sigma split.

    Output tile spans all 2*O_pad lanes: lanes [0, o_pad) hold z_mu, lanes
    [o_pad, 2*o_pad) hold z_sigma = exp(z_log_var / 2) + EPS.
    """
    z = jnp.dot(x_ref[...], w_ref[...],
                preferred_element_type=jnp.float32) + b_ref[...]
    col = jax.lax.broadcasted_iota(jnp.int32, z.shape, 1)
    sigma = jnp.exp(z * 0.5) + EPS          # EUP exp; free on mu lanes
    out_ref[...] = jnp.where(col >= o_pad, sigma, z).astype(out_ref.dtype)


def _general_kernel(x_ref, w_ref, b_ref, out_ref, acc_ref, *, num_mu_blocks):
    """Tiled fused projection with f32 online accumulation.

    Grid = (batch tiles, output tiles over 2*O_pad, reduction tiles over F).
    Output tiles with j <  num_mu_blocks hold z_mu.
    Output tiles with j >= num_mu_blocks hold z_sigma = exp(z_log_var/2)+EPS.
    """
    k = pl.program_id(2)
    last_k = k == pl.num_programs(2) - 1
    is_var = pl.program_id(1) >= num_mu_blocks

    @pl.when(k == 0)
    def _init():
        # Initialize the accumulator with the (resident) bias tile so the
        # finalize branches only cast / exp.
        acc_ref[...] = jnp.broadcast_to(b_ref[...], acc_ref.shape)

    # bf16 x bf16 -> f32 accumulation on the MXU.
    acc_ref[...] += jnp.dot(x_ref[...], w_ref[...],
                            preferred_element_type=jnp.float32)

    @pl.when(jnp.logical_and(last_k, jnp.logical_not(is_var)))
    def _store_mu():
        out_ref[...] = acc_ref[...].astype(out_ref.dtype)

    @pl.when(jnp.logical_and(last_k, is_var))
    def _store_sigma():
        out_ref[...] = (jnp.exp(acc_ref[...] * 0.5) + EPS).astype(out_ref.dtype)


# --------------------------------------------------------------------------
# Parameter preparation (hoisted out of the per-forward path)
# --------------------------------------------------------------------------
class FusedParams(NamedTuple):
    w_fused: jax.Array       # (f_pad, 2*o_pad), compute dtype
    b_fused: jax.Array       # (1, 2*o_pad), f32
    out_size: int            # O
    o_pad: int
    in_features: int         # F
    f_pad: int
    fast: bool
    tk: int
    to: int
    num_mu_blocks: int


def prepare_fused_params(w_mu, b_mu, w_var, b_var, *,
                         compute_dtype=jnp.bfloat16,
                         force_general=False,
                         tk_cap=TK_CAP, to_cap=TO_CAP):
    """Fuse + pad the two Linear layers once (weights are static per module)."""
    F, O = w_mu.shape
    o_pad = _round_up(O, 128)

    fast = (not force_general) and (F <= FAST_F_MAX) and (2 * o_pad <= FAST_TO_MAX)
    if fast:
        # Single reduction tile, single output tile: no F padding at all.
        f_pad, tk, to, num_mu_blocks = F, F, 2 * o_pad, 1
    else:
        tk = min(_round_up(F, 128), tk_cap)
        f_pad = _round_up(F, tk)
        to = min(o_pad, to_cap)
        # Keep the mu/var boundary tile-aligned (only over-pads when O > to_cap,
        # which is unrealistic for a concept layer).
        o_pad = _round_up(O, to)
        num_mu_blocks = o_pad // to

    pad_f, pad_o = f_pad - F, o_pad - O
    w_fused = jnp.concatenate(
        [jnp.pad(w_mu.astype(compute_dtype), ((0, pad_f), (0, pad_o))),
         jnp.pad(w_var.astype(compute_dtype), ((0, pad_f), (0, pad_o)))], axis=1)
    b_fused = jnp.concatenate(
        [jnp.pad(b_mu.reshape(1, O).astype(jnp.float32), ((0, 0), (0, pad_o))),
         jnp.pad(b_var.reshape(1, O).astype(jnp.float32), ((0, 0), (0, pad_o)))],
        axis=1)
    return FusedParams(w_fused, b_fused, O, o_pad, F, f_pad, fast, tk, to,
                       num_mu_blocks)


# --------------------------------------------------------------------------
# Forward
# --------------------------------------------------------------------------
def probabilistic_concept_encoder(x, params: FusedParams, concept_shape, *,
                                  out_dtype=jnp.float32):
    """Returns (z_mu, z_sigma) reshaped to (batch, *concept_shape).

    These are the parameters of Normal(z_mu, z_sigma) (qz_x) that the PyTorch
    module's forward wraps in a ConceptDistribution; p_z is Normal(0, 1) of
    the same shape.
    """
    B, F = x.shape
    assert F == params.in_features

    tb = min(_round_up(B, 8), TB_CAP)
    b_pad = _round_up(B, tb)
    o_pad, f_pad = params.o_pad, params.f_pad

    x_c = x.astype(params.w_fused.dtype)
    if b_pad != B or f_pad != F:
        x_c = jnp.pad(x_c, ((0, b_pad - B), (0, f_pad - F)))

    if params.fast:
        out = pl.pallas_call(
            partial(_fast_kernel, o_pad=o_pad),
            out_shape=jax.ShapeDtypeStruct((b_pad, 2 * o_pad), out_dtype),
            grid_spec=pltpu.PrefetchScalarGridSpec(
                num_scalar_prefetch=0,
                grid=(b_pad // tb,),
                in_specs=[
                    pl.BlockSpec((tb, f_pad), lambda i: (i, 0)),
                    pl.BlockSpec((f_pad, 2 * o_pad), lambda i: (0, 0)),
                    pl.BlockSpec((1, 2 * o_pad), lambda i: (0, 0)),
                ],
                out_specs=pl.BlockSpec((tb, 2 * o_pad), lambda i: (i, 0)),
            ),
            compiler_params=pltpu.CompilerParams(
                dimension_semantics=("parallel",)),
        )(x_c, params.w_fused, params.b_fused)
    else:
        tk, to = params.tk, params.to
        grid = (b_pad // tb, (2 * o_pad) // to, f_pad // tk)
        out = pl.pallas_call(
            partial(_general_kernel, num_mu_blocks=params.num_mu_blocks),
            out_shape=jax.ShapeDtypeStruct((b_pad, 2 * o_pad), out_dtype),
            grid_spec=pltpu.PrefetchScalarGridSpec(
                num_scalar_prefetch=0,
                grid=grid,
                in_specs=[
                    # x: independent of the output-tile axis -> reused across
                    # all output tiles.
                    pl.BlockSpec((tb, tk), lambda i, j, k: (i, k)),
                    # fused [W_mu | W_var]
                    pl.BlockSpec((tk, to), lambda i, j, k: (k, j)),
                    # fused bias, resident per output tile
                    pl.BlockSpec((1, to), lambda i, j, k: (0, j)),
                ],
                out_specs=pl.BlockSpec((tb, to), lambda i, j, k: (i, j)),
                scratch_shapes=[pltpu.VMEM((tb, to), jnp.float32)],
            ),
            compiler_params=pltpu.CompilerParams(
                dimension_semantics=("parallel", "parallel", "arbitrary")),
        )(x_c, params.w_fused, params.b_fused)

    out_shape = (B,) + tuple(concept_shape)
    z_mu = out[:B, :params.out_size].reshape(out_shape)
    z_sigma = out[:B, o_pad:o_pad + params.out_size].reshape(out_shape)
    return z_mu, z_sigma


# --------------------------------------------------------------------------
# Test harness
# --------------------------------------------------------------------------
def init_linear_params(key, in_features, out_features):
    """torch.nn.Linear-style init (uniform +/- 1/sqrt(fan_in)).

    Weight is returned already transposed as (in_features, out_features)."""
    kw, kb = jax.random.split(key)
    bound = 1.0 / math.sqrt(in_features)
    w = jax.random.uniform(kw, (in_features, out_features), jnp.float32,
                           -bound, bound)
    b = jax.random.uniform(kb, (1, out_features), jnp.float32, -bound, bound)
    return w, b


def _check(x, w_mu, b_mu, w_var, b_var, z_mu, z_sigma, concept_shape):
    B = x.shape[0]
    # Reference 1: same bf16 operand rounding as the kernel (tight tolerance).
    xc = x.astype(jnp.bfloat16)
    ref_mu_bf = (jnp.dot(xc, w_mu.astype(jnp.bfloat16),
                         preferred_element_type=jnp.float32) + b_mu
                 ).reshape(B, *concept_shape)
    ref_lv_bf = (jnp.dot(xc, w_var.astype(jnp.bfloat16),
                         preferred_element_type=jnp.float32) + b_var
                 ).reshape(B, *concept_shape)
    ref_sigma_bf = jnp.exp(ref_lv_bf * 0.5) + EPS
    assert jnp.allclose(z_mu, ref_mu_bf, atol=2e-4, rtol=2e-4)
    assert jnp.allclose(z_sigma, ref_sigma_bf, atol=2e-4, rtol=2e-4)
    # Reference 2: full f32 math (loose tolerance; catches structural bugs).
    ref_mu_f32 = (x @ w_mu + b_mu).reshape(B, *concept_shape)
    ref_sigma_f32 = jnp.exp((x @ w_var + b_var) * 0.5) + EPS
    ref_sigma_f32 = ref_sigma_f32.reshape(B, *concept_shape)
    assert jnp.allclose(z_mu, ref_mu_f32, atol=5e-2, rtol=5e-2)
    assert jnp.allclose(z_sigma, ref_sigma_f32, atol=5e-2, rtol=5e-2)


if __name__ == "__main__":
    # out_concept_dimensions = {1: ["concept_a", "concept_b"], 2: 3}
    #   -> concept_shape = (2, 3), output_size = 6
    concept_shape = (2, 3)
    output_size = 6
    batch, in_features = 8, 32

    key = jax.random.PRNGKey(0)
    k_x, k_mu, k_var, k_x2, k_mu2, k_var2 = jax.random.split(key, 6)

    # ---- demo shape: fast path (single grid step, no scratch) --------------
    x = jax.random.normal(k_x, (batch, in_features), jnp.float32)
    w_mu, b_mu = init_linear_params(k_mu, in_features, output_size)
    w_var, b_var = init_linear_params(k_var, in_features, output_size)

    params = prepare_fused_params(w_mu, b_mu, w_var, b_var)   # hoisted, once
    assert params.fast
    z_mu, z_sigma = probabilistic_concept_encoder(x, params, concept_shape)
    jax.block_until_ready((z_mu, z_sigma))
    assert z_mu.shape == (batch, *concept_shape)
    assert z_sigma.shape == (batch, *concept_shape)
    _check(x, w_mu, b_mu, w_var, b_var, z_mu, z_sigma, concept_shape)

    # ---- larger shape forced down the tiled accumulator (general) path -----
    b2, f2 = 16, 320
    x2 = jax.random.normal(k_x2, (b2, f2), jnp.float32)
    w_mu2, b_mu2 = init_linear_params(k_mu2, f2, output_size)
    w_var2, b_var2 = init_linear_params(k_var2, f2, output_size)
    params2 = prepare_fused_params(w_mu2, b_mu2, w_var2, b_var2,
                                   force_general=True, tk_cap=128)
    assert not params2.fast
    z_mu2, z_sigma2 = probabilistic_concept_encoder(x2, params2, concept_shape)
    jax.block_until_ready((z_mu2, z_sigma2))
    assert z_mu2.shape == (b2, *concept_shape)
    _check(x2, w_mu2, b_mu2, w_var2, b_var2, z_mu2, z_sigma2, concept_shape)

    # TODO(synk): ConceptDistribution / torch.distributions.Normal wrapper and
    # the p_z = Normal(0, 1) prior have no Pallas equivalent; the kernel
    # returns the distribution parameters (z_mu, z_sigma) instead.
    print("KERNEL_OK")
</pallas_src>

<mosaic_0001>
module attributes {stable_mosaic.version = 11 : i64} {
  func.func @_fast_kernel(%arg0: i32, %arg1: memref<8x32xbf16, #tpu.memory_space<vmem>>, %arg2: memref<32x256xbf16, #tpu.memory_space<vmem>>, %arg3: memref<1x256xf32, #tpu.memory_space<vmem>>, %arg4: memref<8x256xf32, #tpu.memory_space<vmem>>) attributes {dimension_semantics = [#tpu.dimension_semantics<parallel>], iteration_bounds = array<i64: 1>, scalar_prefetch = 0 : i64, scratch_operands = 0 : i64, tpu.core_type = #tpu.core_type<tc>, window_params = [{transform_indices = @transform_0, window_bounds = array<i64: 8, 32>}, {pipeline_mode = #tpu.pipeline_mode<synchronous>, transform_indices = @transform_1, window_bounds = array<i64: 32, 256>}, {pipeline_mode = #tpu.pipeline_mode<synchronous>, transform_indices = @transform_2, window_bounds = array<i64: 1, 256>}, {transform_indices = @transform_3, window_bounds = array<i64: 8, 256>}]} {
    %c0 = arith.constant 0 : index
    %c0_0 = arith.constant 0 : index
    %0 = vector.load %arg1[%c0, %c0_0] : memref<8x32xbf16, #tpu.memory_space<vmem>>, vector<8x32xbf16>
    %c0_1 = arith.constant 0 : index
    %c0_2 = arith.constant 0 : index
    %1 = vector.load %arg2[%c0_1, %c0_2] : memref<32x256xbf16, #tpu.memory_space<vmem>>, vector<32x256xbf16>
    %cst = arith.constant dense<0.000000e+00> : vector<8x256xf32>
    %2 = tpu.matmul %0, %1, %cst {dimension_numbers = #tpu.dot_dimension_numbers<[1], [0], [0], [1], [0, 0, 1, 1], [], []>} : vector<8x32xbf16>, vector<32x256xbf16>, vector<8x256xf32> -> vector<8x256xf32>
    %c0_3 = arith.constant 0 : index
    %c0_4 = arith.constant 0 : index
    %3 = vector.load %arg3[%c0_3, %c0_4] : memref<1x256xf32, #tpu.memory_space<vmem>>, vector<1x256xf32>
    %4 = vector.broadcast %3 : vector<1x256xf32> to vector<8x256xf32>
    %5 = arith.addf %2, %4 : vector<8x256xf32>
    %6 = tpu.iota {dimensions = array<i32: 1>} : vector<8x256xi32>
    %cst_5 = arith.constant 5.000000e-01 : f32
    %7 = vector.broadcast %cst_5 : f32 to vector<8x256xf32>
    %8 = arith.mulf %5, %7 : vector<8x256xf32>
    %9 = math.exp %8 : vector<8x256xf32>
    %cst_6 = arith.constant 9.99999993E-9 : f32
    %10 = vector.broadcast %cst_6 : f32 to vector<8x256xf32>
    %11 = arith.addf %9, %10 : vector<8x256xf32>
    %c128_i32 = arith.constant 128 : i32
    %12 = vector.broadcast %c128_i32 : i32 to vector<8x256xi32>
    %13 = arith.cmpi sge, %6, %12 : vector<8x256xi32>
    %14 = arith.select %13, %11, %5 : vector<8x256xi1>, vector<8x256xf32>
    %c0_7 = arith.constant 0 : index
    %c0_8 = arith.constant 0 : index
    %15 = vector.load %arg4[%c0_7, %c0_8] : memref<8x256xf32, #tpu.memory_space<vmem>>, vector<8x256xf32>
    tpu.vector_store %arg4[%c0_7, %c0_8], %14 {strides = array<i32>} : memref<8x256xf32, #tpu.memory_space<vmem>>, vector<8x256xf32>,
    return
  }
  func.func @transform_0(%arg0: i32) -> (i32, i32) {
    %c0_i32 = arith.constant 0 : i32
    %c0_i32_0 = arith.constant 0 : i32
    return %arg0, %c0_i32 : i32, i32
  }
  func.func @transform_1(%arg0: i32) -> (i32, i32) {
    %c0_i32 = arith.constant 0 : i32
    %c0_i32_0 = arith.constant 0 : i32
    %c0_i32_1 = arith.constant 0 : i32
    return %c0_i32, %c0_i32_0 : i32, i32
  }
  func.func @transform_2(%arg0: i32) -> (i32, i32) {
    %c0_i32 = arith.constant 0 : i32
    %c0_i32_0 = arith.constant 0 : i32
    %c0_i32_1 = arith.constant 0 : i32
    return %c0_i32, %c0_i32_0 : i32, i32
  }
  func.func @transform_3(%arg0: i32) -> (i32, i32) {
    %c0_i32 = arith.constant 0 : i32
    %c0_i32_0 = arith.constant 0 : i32
    return %arg0, %c0_i32 : i32, i32
  }
}

</mosaic_0001>

<bundles_post_ra>
// kernel: tpu_custom_call.1
= control target key start
LH: loop header
LB: loop body
LE: loop exit
PB: predicated region body
PF: predicated region fallthrough
CT: control target
= control target key end

     0   :  { %8 = vsyncpa [#allocation3], 0  ;;  %s280_s0 = inlined_call_operand.hbm [shape: bf16[8,32], index: 0, kind: input, shape index: {}]   ;;  %s281_s1 = inlined_call_operand.hbm [shape: bf16[32,256], index: 1, kind: input, shape index: {}]   ;;  %s282_s2 = inlined_call_operand.vmem [shape: f32[1,256], index: 2, kind: input, shape index: {}]   ;;  %s283_s3 = inlined_call_operand.hbm [shape: f32[8,256], index: 3, kind: output, shape index: {}]  }
   0x1   :  { %9 = vsyncpa [#allocation6], 0 }
   0x2   :  { %10 = vsyncpa [#allocation4], 0  ;;  %s242_s12 = smov [#allocation2]   ;;  %s243_s14 = smov [#allocation5]  }
   0x3   :  { %s17_s13 = sshll.u32 %s242_s12, 4  ;;  %s26_s15 = sshll.u32 %s243_s14, 4  ;;  %s18_s13 = int_to_ptr.vmem [resolvable:$true] %s17_s13  ;;  %s27_s15 = int_to_ptr.vmem [resolvable:$true] %s26_s15 }
   0x4   :  { %s184_s16 = scalar_lea.vmem %s18_s13, 64  ;;  %p189_p1 = scmp.lt.s32.totalorder %s18_s13, %s18_s13 }
   0x5   :  { %p185_p0 = scmp.ne.s32.totalorder %s18_s13, %s184_s16  ;;  %p190_p2 = scmp.lt.s32.totalorder %s184_s16, %s184_s16 }
   0x7   :  { %p191_p3 = por %p190_p2, %p189_p1 }
   0x9   :  { %p192_p4 = pnand %p191_p3, %p185_p0 }
   0xb   :  { %195 = shalt.err (!%p192_p4)
}
   0xc   :  { %20 = dma.hbm_to_vmem [thread:$0]  %s280_s0, 64, %s18_s13, [#allocation3]  }
   0xd   :  { %s204_s19 = scalar_lea.vmem %s27_s15, 512  ;;  %p209_p6 = scmp.lt.s32.totalorder %s27_s15, %s27_s15 }
   0xe   :  { %p205_p5 = scmp.ne.s32.totalorder %s27_s15, %s204_s19  ;;  %p210_p7 = scmp.lt.s32.totalorder %s204_s19, %s204_s19 }
  0x10   :  { %p211_p8 = por %p210_p7, %p209_p6 }
  0x12   :  { %p212_p9 = pnand %p211_p8, %p205_p5 }
  0x14   :  { %215 = shalt.err (!%p212_p9)
}
  0x15   :  { %s244_s20 = smov 128   ;;  %s245_s21 = smov 8  }
  0x16   :  { %32 = dma.hbm_to_vmem [thread:$0]  %s281_s1, 512, %s27_s15, [#allocation6], %s244_s20, %s244_s20, %s245_s21  }
  0x17   :  { %236 = dma.done.wait [#allocation3], 64  }
  0x18   :  { %237 = vsyncadd [#allocation3], 4294967232 }
  0x19   :  { %238 = dma.done.wait [#allocation6], 512  }
  0x1a   :  { %239 = vsyncadd [#allocation6], 4294966784  ;;  %v246_v0 = vmov 0   ;;  %v168_v1 = vld [vmem:[#allocation5 + $0x14] ss:$8 sps:$4 sm:$0xff]   ;;  %vm79_vm0 = vcmask 261120   ;;  %v49_v6 = vlaneseq }
  0x1b   :  { %115 = vmatprep.mubr.bf16.mxu0 %v246_v0  ;;  %v170_v2 = vld [vmem:[#allocation5 + $0x10] ss:$8 sps:$4 sm:$0xff]   ;;  %95 = vmatprep.subr.bf16.mxu0 %v168_v1  ;;  %v171_v3 = vld [vmem:[#allocation5 + $0x4] ss:$8 sps:$4 sm:$0xff]   ;;  %v173_v4 = vld [vmem:[#allocation5] ss:$8 sps:$4 sm:$0xff]  }
  0x1c   :  { %96 = vmatpush1.bf16.msra.mxu0 %v170_v2  ;;  %v42_v5 = vld [vmem:[#allocation2] sm:$0xf]  ;;  %v50_v7 = vshrl.u32 %v49_v6, 7  ;;  %s247_s24 = smov [#allocation7]  }
  0x1d   :  { %97 = vmatprep.subr.bf16.mxu0 %v171_v3  ;;  %v47_v9 = vld [vmem:[%s282_s2] sm:$0x3]  ;;  %s147_s25 = sshll.u32 %s247_s24, 4  ;;  %s148_s25 = int_to_ptr.vmem [resolvable:$true] %s147_s25 }
  0x1e   :  { %v51_v8 = vsub.s32 0, %v50_v7  ;;  %v55_v10 = vsub.s32 1, %v50_v7  ;;  %s216_s2 = scalar_lea.vmem %s148_s25, 256  ;;  %p221_p11 = scmp.lt.s32.totalorder %s148_s25, %s148_s25 }
  0x1f   :  { %p217_p10 = scmp.ne.s32.totalorder %s148_s25, %s216_s2  ;;  %p222_p12 = scmp.lt.s32.totalorder %s216_s2, %s216_s2 }
  0x20   :  { %98 = vmatpush1.bf16.msra.mxu0 %v173_v4  ;;  %v52_v11 = vrot.slane %v47_v9, %v51_v8  ;;  %v56_v12 = vrot.slane %v47_v9, %v55_v10 }
  0x21   :  { %p223_p13 = por %p222_p12, %p221_p11 }
  0x23   :  { %161 = vmatmul.mubr.msk.bf16.vlgmr.msra.gmra.mxu0 %vm79_vm0, %v42_v5  ;;  %p224_p0 = pnand %p223_p13, %p217_p10 }
  0xe3   :  { %v117_v13 = vpop.f32.mrf.mxu0 }
  0xe4   :  { %v118_v14 = vadd.f32 %v117_v13, %v52_v11 }
  0xe5   :  { %v119_v15 = vpop.f32.mrf.mxu0 }
  0xe6   :  { %139 = vst [vmem:[#allocation7] sm:$0xff] %v118_v14  ;;  %v120_v16 = vadd.f32 %v119_v15, %v56_v12 }
  0xe7   :  { %v121_v17 = vpop.f32.mrf.mxu0 }
  0xe8   :  { %v128_v18 = vmul.f32 0.5, %v120_v16 }
  0xe9   :  { %v122_v19 = vpop.f32.mrf.mxu0 }
  0xea   :  { %v131_v20 = vmul.f32 1.442695, %v128_v18 }
  0xec   :  { %174 = vpow2.f32 %v131_v20 }
  0xf9   :  { %v175_v21 = vpop.eup %174 }
  0xfa   :  { %v134_v22 = vadd.f32 1e-08, %v175_v21 }
  0xfc   :  { %140 = vst [vmem:[#allocation7 + $0x8] sm:$0xff] %v134_v22 }
  0xfd   :  { %227 = shalt.err (!%p224_p0)
}
  0xfe   :  { %150 = dma.vmem_to_hbm [thread:$0]  %s148_s25, 256, %s283_s3, [#allocation4]  }
  0xff   :  { %240 = dma.done.wait [#allocation4], 256  }
 0x100   :  { %241 = vsyncadd [#allocation4], 4294967040 }
 0x101   :  { %154 = vsyncpa [#allocation3], 1 }
 0x102   :  { %155 = vsyncpa [#allocation6], 1 }
 0x103   :  { %156 = vsyncpa [#allocation4], 1 }

</bundles_post_ra>
